<compile_context>
chip_gen: v6e
topology: v6e:2x2x1
jax: 0.10.0
libtpu: 0.0.40
codegen_flags: <defaults>
</compile_context>

<pallas_src>
import functools

import jax
import jax.numpy as jnp
from jax import lax
from jax.experimental import pallas as pl
from jax.experimental.pallas import tpu as pltpu

_LANES = 128
_SUBLANES = 8


def _round_up(x, m):
    return ((x + m - 1) // m) * m


def _huber_kernel(pred_ref, gt_ref, psum_ref, pcnt_ref, *,
                  delta, rows_total, n_half, need_tail_mask):
    j = pl.program_id(2)

    @pl.when(j == 0)
    def _init():
        psum_ref[...] = jnp.zeros_like(psum_ref)
        pcnt_ref[...] = jnp.zeros_like(pcnt_ref)

    o = pred_ref[...].astype(jnp.float32)   # (tile_rows, lanes) — channel 0 only
    g = gt_ref[...].astype(jnp.float32)
    tile_rows, lanes = o.shape

    mask = g > 0.0
    if need_tail_mask:
        # Built only when the row range is ragged (trace-time check).  Masks
        # both the partial last block and any clamped duplicate block of the
        # 2-way core split.  Must stay a select (jnp.where below), never a
        # multiply-by-mask, so OOB garbage (NaN/Inf) cannot leak.
        blk = pl.program_id(1) * n_half + j
        row = lax.broadcasted_iota(jnp.int32, (tile_rows, lanes), 0) + blk * tile_rows
        mask = jnp.logical_and(mask, row < rows_total)

    err = jnp.abs(o - g)
    squared_err = 0.5 * err * err
    linear_err = err - 0.5 * delta
    val = jnp.where(err < delta, squared_err, linear_err)
    val = jnp.where(mask, val, 0.0)
    cnt = jnp.where(mask, 1.0, 0.0)

    # Fold sublane groups into the resident (8, lanes) accumulators: pure
    # full-vreg VPU adds; the single cross-lane reduce happens once, in JAX.
    psum_ref[...] += val.reshape(tile_rows // _SUBLANES, _SUBLANES, lanes).sum(axis=0)
    pcnt_ref[...] += cnt.reshape(tile_rows // _SUBLANES, _SUBLANES, lanes).sum(axis=0)


def huber_loss_pallas(outputs, gt, inputs=None, epoch=0, delta=10.0,
                      tile_bytes=4 << 20):
    """Forward of Huber_loss: mean Huber(outputs[:, 0:1] - gt) over gt > 0."""
    # `inputs` and `epoch` are unused by the reference forward; kept for parity.
    del inputs, epoch

    if gt.ndim == 3:
        gt = gt[:, None, :, :]
    n, c, h, w = outputs.shape

    # Lane-dense layout when possible (free metadata reshape of contiguous NCHW).
    hw = h * w
    if hw % _LANES == 0:
        lanes = _LANES
        rows_total = hw // _LANES
        pred = outputs.reshape(n, c, rows_total, lanes)
        gt_r = gt.reshape(n, 1, rows_total, lanes)
    else:
        lanes = w
        rows_total = h
        pred = outputs
        gt_r = gt

    # Tile sizing by actual itemsize; bf16 uses the native (16, 128) sublane tile.
    item_pred = jnp.dtype(pred.dtype).itemsize
    item_gt = jnp.dtype(gt_r.dtype).itemsize
    sub = 16 if min(item_pred, item_gt) < 4 else _SUBLANES
    lane_pad = _round_up(lanes, _LANES)
    bytes_per_row = lane_pad * max(item_pred, item_gt)
    target_rows = max(sub, (tile_bytes // bytes_per_row) // sub * sub)
    rows_rounded = _round_up(rows_total, sub)
    tile_rows = min(target_rows, rows_rounded)
    n_blocks = pl.cdiv(rows_total, tile_rows)

    # Single-image calls: force at least two row blocks so v7x's second
    # TensorCore gets work (neutral on single-TC v5e/v6e).
    if n == 1 and n_blocks == 1 and rows_rounded >= 2 * sub:
        tile_rows = _round_up(pl.cdiv(rows_total, 2), sub)
        n_blocks = pl.cdiv(rows_total, tile_rows)

    core_split = 2 if n_blocks >= 2 else 1
    n_half = pl.cdiv(n_blocks, core_split)
    need_tail_mask = (rows_total % tile_rows != 0) or (core_split * n_half != n_blocks)

    def in_map(i, cc, j):
        # Clamp so the odd-block-count duplicate of the 2-way split never DMAs
        # out of bounds; the in-kernel row mask zeroes its contribution.
        return (i, 0, jnp.minimum(cc * n_half + j, n_blocks - 1), 0)

    grid = (n, core_split, n_half)

    # 2 inputs x 2 pipeline buffers, plus headroom for f32 temporaries; clamp
    # inside every generation's scoped-VMEM budget (v7x has 64 MiB physical).
    in_vmem = 2 * tile_rows * lane_pad * (item_pred + item_gt)
    vmem_limit = int(min(max(4 * in_vmem, 32 << 20), 48 << 20))

    psum, pcnt = pl.pallas_call(
        functools.partial(
            _huber_kernel, delta=float(delta), rows_total=rows_total,
            n_half=n_half, need_tail_mask=need_tail_mask),
        out_shape=(
            jax.ShapeDtypeStruct((n, core_split, _SUBLANES, lanes), jnp.float32),
            jax.ShapeDtypeStruct((n, core_split, _SUBLANES, lanes), jnp.float32),
        ),
        grid_spec=pltpu.PrefetchScalarGridSpec(
            num_scalar_prefetch=0,
            grid=grid,
            in_specs=[
                # Full NCHW outputs; index_map pins channel 0 -> only channel-0
                # bytes ever stream from HBM (no wrapper slice copy).
                pl.BlockSpec((None, None, tile_rows, lanes), in_map),
                pl.BlockSpec((None, None, tile_rows, lanes), in_map),
            ],
            out_specs=[
                pl.BlockSpec((None, None, _SUBLANES, lanes),
                             lambda i, cc, j: (i, cc, 0, 0)),
                pl.BlockSpec((None, None, _SUBLANES, lanes),
                             lambda i, cc, j: (i, cc, 0, 0)),
            ],
        ),
        compiler_params=pltpu.CompilerParams(
            dimension_semantics=("parallel", "parallel", "arbitrary"),
            vmem_limit_bytes=vmem_limit,
        ),
    )(pred, gt_r)

    # Exact integer count (no f32 precision loss above 2^24 valid pixels).
    # torch.mean over masked elements == masked_sum / masked_count;
    # 0/0 -> NaN matches torch.mean of an empty tensor (intentional).
    total_cnt = jnp.sum(pcnt.astype(jnp.int32))
    return jnp.sum(psum) / total_cnt.astype(jnp.float32)


def huber_loss_ref(outputs, gt, delta=10.0):
    if gt.ndim == 3:
        gt = gt[:, None, :, :]
    o = outputs[:, 0:1, :, :].astype(jnp.float32)
    g = gt.astype(jnp.float32)
    err = jnp.abs(o - g)
    mask = g > 0
    squared_err = 0.5 * err ** 2
    linear_err = err - 0.5 * delta
    val = jnp.where(err < delta, squared_err, linear_err)
    return jnp.sum(jnp.where(mask, val, 0.0)) / jnp.sum(mask)


if __name__ == "__main__":
    key = jax.random.PRNGKey(0)

    cases = [
        # (N, C, H, W, dtype, tile_bytes)
        (2, 4, 16, 16, jnp.float32, 4 << 20),   # spec shape, lane-dense (HW=256)
        (1, 3, 64, 64, jnp.float32, 4 << 20),   # N=1 -> forced 2-way core split
        (2, 2, 7, 20, jnp.float32, 4 << 20),    # HW % 128 != 0 -> W-lane fallback, ragged
        (1, 4, 80, 48, jnp.bfloat16, 4 << 20),  # bf16 inputs, split + ragged tail
        (2, 1, 48, 128, jnp.float32, 8192),     # tiny tiles -> odd block count (clamp path)
    ]

    for idx, (n, c, h, w, dtype, tb) in enumerate(cases):
        k1, k2, k3 = jax.random.split(jax.random.fold_in(key, idx), 3)
        outputs = (jax.random.normal(k1, (n, c, h, w), dtype=jnp.float32) * 5.0).astype(dtype)
        # gt: mix of positive (valid) and non-positive (masked-out) depths.
        gt = (jax.random.normal(k2, (n, 1, h, w), dtype=jnp.float32) * 8.0).astype(dtype)
        inp = jax.random.normal(k3, (n, c, h, w), dtype=jnp.float32)

        loss = huber_loss_pallas(outputs, gt, inp, epoch=0, delta=10.0, tile_bytes=tb)
        loss = jax.block_until_ready(loss)
        ref = huber_loss_ref(outputs, gt, delta=10.0)

        tol = 1e-4 if dtype == jnp.bfloat16 else 2e-5
        assert jnp.allclose(loss, ref, rtol=tol, atol=tol), (idx, loss, ref)

    print("KERNEL_OK")
</pallas_src>

<mosaic_0001>
module attributes {stable_mosaic.version = 11 : i64} {
  func.func @_huber_kernel(%arg0: i32, %arg1: i32, %arg2: i32, %arg3: memref<1x1x8x128xf32, #tpu.memory_space<vmem>>, %arg4: memref<1x1x8x128xf32, #tpu.memory_space<vmem>>, %arg5: memref<1x1x8x128xf32, #tpu.memory_space<vmem>>, %arg6: memref<1x1x8x128xf32, #tpu.memory_space<vmem>>) attributes {dimension_semantics = [#tpu.dimension_semantics<parallel>, #tpu.dimension_semantics<parallel>, #tpu.dimension_semantics<arbitrary>], iteration_bounds = array<i64: 2, 1, 1>, scalar_prefetch = 0 : i64, scratch_operands = 0 : i64, tpu.core_type = #tpu.core_type<tc>, window_params = [{transform_indices = @transform_0, window_bounds = array<i64: 1, 1, 8, 128>}, {transform_indices = @transform_1, window_bounds = array<i64: 1, 1, 8, 128>}, {transform_indices = @transform_2, window_bounds = array<i64: 1, 1, 8, 128>}, {transform_indices = @transform_3, window_bounds = array<i64: 1, 1, 8, 128>}]} {
    %c0_i32 = arith.constant 0 : i32
    %0 = arith.cmpi eq, %arg2, %c0_i32 : i32
    %1 = arith.extui %0 : i1 to i32
    %c0_i32_0 = arith.constant 0 : i32
    %2 = arith.cmpi ne, %1, %c0_i32_0 : i32
    scf.if %2 {
      %cst_32 = arith.constant 0.000000e+00 : f32
      %49 = vector.broadcast %cst_32 : f32 to vector<8x128xf32>
      %c0_33 = arith.constant 0 : index
      %c0_34 = arith.constant 0 : index
      %c0_35 = arith.constant 0 : index
      %c0_36 = arith.constant 0 : index
      %50 = vector.load %arg5[%c0_33, %c0_34, %c0_35, %c0_36] : memref<1x1x8x128xf32, #tpu.memory_space<vmem>>, vector<1x1x8x128xf32>
      %51 = vector.shape_cast %50 : vector<1x1x8x128xf32> to vector<8x128xf32>
      %52 = vector.shape_cast %49 : vector<8x128xf32> to vector<1x1x8x128xf32>
      tpu.vector_store %arg5[%c0_33, %c0_34, %c0_35, %c0_36], %52 {strides = array<i32>} : memref<1x1x8x128xf32, #tpu.memory_space<vmem>>, vector<1x1x8x128xf32>,
      %cst_37 = arith.constant 0.000000e+00 : f32
      %53 = vector.broadcast %cst_37 : f32 to vector<8x128xf32>
      %c0_38 = arith.constant 0 : index
      %c0_39 = arith.constant 0 : index
      %c0_40 = arith.constant 0 : index
      %c0_41 = arith.constant 0 : index
      %54 = vector.load %arg6[%c0_38, %c0_39, %c0_40, %c0_41] : memref<1x1x8x128xf32, #tpu.memory_space<vmem>>, vector<1x1x8x128xf32>
      %55 = vector.shape_cast %54 : vector<1x1x8x128xf32> to vector<8x128xf32>
      %56 = vector.shape_cast %53 : vector<8x128xf32> to vector<1x1x8x128xf32>
      tpu.vector_store %arg6[%c0_38, %c0_39, %c0_40, %c0_41], %56 {strides = array<i32>} : memref<1x1x8x128xf32, #tpu.memory_space<vmem>>, vector<1x1x8x128xf32>,
    } else {
    }
    %c0 = arith.constant 0 : index
    %c0_1 = arith.constant 0 : index
    %c0_2 = arith.constant 0 : index
    %c0_3 = arith.constant 0 : index
    %3 = vector.load %arg3[%c0, %c0_1, %c0_2, %c0_3] : memref<1x1x8x128xf32, #tpu.memory_space<vmem>>, vector<1x1x8x128xf32>
    %4 = vector.shape_cast %3 : vector<1x1x8x128xf32> to vector<8x128xf32>
    %c0_4 = arith.constant 0 : index
    %c0_5 = arith.constant 0 : index
    %c0_6 = arith.constant 0 : index
    %c0_7 = arith.constant 0 : index
    %5 = vector.load %arg4[%c0_4, %c0_5, %c0_6, %c0_7] : memref<1x1x8x128xf32, #tpu.memory_space<vmem>>, vector<1x1x8x128xf32>
    %6 = vector.shape_cast %5 : vector<1x1x8x128xf32> to vector<8x128xf32>
    %cst = arith.constant 0.000000e+00 : f32
    %7 = vector.broadcast %cst : f32 to vector<8x128xf32>
    %8 = arith.cmpf ogt, %6, %7 : vector<8x128xf32>
    %c1_i32 = arith.constant 1 : i32
    %9 = arith.muli %arg1, %c1_i32 : i32
    %10 = arith.addi %9, %arg2 : i32
    %11 = tpu.iota {dimensions = array<i32: 0>} : vector<8x128xi32>
    %c8_i32 = arith.constant 8 : i32
    %12 = arith.muli %10, %c8_i32 : i32
    %13 = vector.broadcast %12 : i32 to vector<8x128xi32>
    %14 = arith.addi %11, %13 : vector<8x128xi32>
    %c2_i32 = arith.constant 2 : i32
    %15 = vector.broadcast %c2_i32 : i32 to vector<8x128xi32>
    %16 = arith.cmpi slt, %14, %15 : vector<8x128xi32>
    %17 = arith.andi %8, %16 : vector<8x128xi1>
    %18 = arith.subf %4, %6 : vector<8x128xf32>
    %19 = math.absf %18 : vector<8x128xf32>
    %cst_8 = arith.constant 5.000000e-01 : f32
    %20 = vector.broadcast %cst_8 : f32 to vector<8x128xf32>
    %21 = arith.mulf %20, %19 : vector<8x128xf32>
    %22 = arith.mulf %21, %19 : vector<8x128xf32>
    %cst_9 = arith.constant 5.000000e+00 : f32
    %23 = vector.broadcast %cst_9 : f32 to vector<8x128xf32>
    %24 = arith.subf %19, %23 : vector<8x128xf32>
    %cst_10 = arith.constant 1.000000e+01 : f32
    %25 = vector.broadcast %cst_10 : f32 to vector<8x128xf32>
    %26 = arith.cmpf olt, %19, %25 : vector<8x128xf32>
    %27 = arith.select %26, %22, %24 : vector<8x128xi1>, vector<8x128xf32>
    %cst_11 = arith.constant 0.000000e+00 : f32
    %28 = vector.broadcast %cst_11 : f32 to vector<8x128xf32>
    %29 = arith.select %17, %27, %28 : vector<8x128xi1>, vector<8x128xf32>
    %cst_12 = arith.constant 1.000000e+00 : f32
    %cst_13 = arith.constant 0.000000e+00 : f32
    %30 = vector.broadcast %cst_12 : f32 to vector<8x128xf32>
    %31 = vector.broadcast %cst_13 : f32 to vector<8x128xf32>
    %32 = arith.select %17, %30, %31 : vector<8x128xi1>, vector<8x128xf32>
    %c0_14 = arith.constant 0 : index
    %c0_15 = arith.constant 0 : index
    %c0_16 = arith.constant 0 : index
    %c0_17 = arith.constant 0 : index
    %33 = vector.load %arg5[%c0_14, %c0_15, %c0_16, %c0_17] : memref<1x1x8x128xf32, #tpu.memory_space<vmem>>, vector<1x1x8x128xf32>
    %34 = vector.shape_cast %33 : vector<1x1x8x128xf32> to vector<8x128xf32>
    %35 = vector.shape_cast %29 : vector<8x128xf32> to vector<1x8x128xf32>
    %cst_18 = arith.constant dense<0.000000e+00> : vector<8x128xf32>
    %36 = vector.multi_reduction <add>, %35, %cst_18 [0] : vector<1x8x128xf32> to vector<8x128xf32>
    %37 = arith.addf %34, %36 : vector<8x128xf32>
    %c0_19 = arith.constant 0 : index
    %c0_20 = arith.constant 0 : index
    %c0_21 = arith.constant 0 : index
    %c0_22 = arith.constant 0 : index
    %38 = vector.load %arg5[%c0_19, %c0_20, %c0_21, %c0_22] : memref<1x1x8x128xf32, #tpu.memory_space<vmem>>, vector<1x1x8x128xf32>
    %39 = vector.shape_cast %38 : vector<1x1x8x128xf32> to vector<8x128xf32>
    %40 = vector.shape_cast %37 : vector<8x128xf32> to vector<1x1x8x128xf32>
    tpu.vector_store %arg5[%c0_19, %c0_20, %c0_21, %c0_22], %40 {strides = array<i32>} : memref<1x1x8x128xf32, #tpu.memory_space<vmem>>, vector<1x1x8x128xf32>,
    %c0_23 = arith.constant 0 : index
    %c0_24 = arith.constant 0 : index
    %c0_25 = arith.constant 0 : index
    %c0_26 = arith.constant 0 : index
    %41 = vector.load %arg6[%c0_23, %c0_24, %c0_25, %c0_26] : memref<1x1x8x128xf32, #tpu.memory_space<vmem>>, vector<1x1x8x128xf32>
    %42 = vector.shape_cast %41 : vector<1x1x8x128xf32> to vector<8x128xf32>
    %43 = vector.shape_cast %32 : vector<8x128xf32> to vector<1x8x128xf32>
    %cst_27 = arith.constant dense<0.000000e+00> : vector<8x128xf32>
    %44 = vector.multi_reduction <add>, %43, %cst_27 [0] : vector<1x8x128xf32> to vector<8x128xf32>
    %45 = arith.addf %42, %44 : vector<8x128xf32>
    %c0_28 = arith.constant 0 : index
    %c0_29 = arith.constant 0 : index
    %c0_30 = arith.constant 0 : index
    %c0_31 = arith.constant 0 : index
    %46 = vector.load %arg6[%c0_28, %c0_29, %c0_30, %c0_31] : memref<1x1x8x128xf32, #tpu.memory_space<vmem>>, vector<1x1x8x128xf32>
    %47 = vector.shape_cast %46 : vector<1x1x8x128xf32> to vector<8x128xf32>
    %48 = vector.shape_cast %45 : vector<8x128xf32> to vector<1x1x8x128xf32>
    tpu.vector_store %arg6[%c0_28, %c0_29, %c0_30, %c0_31], %48 {strides = array<i32>} : memref<1x1x8x128xf32, #tpu.memory_space<vmem>>, vector<1x1x8x128xf32>,
    return
  }
  func.func @transform_0(%arg0: i32, %arg1: i32, %arg2: i32) -> (i32, i32, i32, i32) {
    %c1_i32 = arith.constant 1 : i32
    %0 = arith.muli %arg1, %c1_i32 : i32
    %1 = arith.addi %0, %arg2 : i32
    %c0_i32 = arith.constant 0 : i32
    %2 = arith.minsi %1, %c0_i32 : i32
    %c0_i32_0 = arith.constant 0 : i32
    %c0_i32_1 = arith.constant 0 : i32
    %c0_i32_2 = arith.constant 0 : i32
    return %arg0, %c0_i32_0, %2, %c0_i32_1 : i32, i32, i32, i32
  }
  func.func @transform_1(%arg0: i32, %arg1: i32, %arg2: i32) -> (i32, i32, i32, i32) {
    %c1_i32 = arith.constant 1 : i32
    %0 = arith.muli %arg1, %c1_i32 : i32
    %1 = arith.addi %0, %arg2 : i32
    %c0_i32 = arith.constant 0 : i32
    %2 = arith.minsi %1, %c0_i32 : i32
    %c0_i32_0 = arith.constant 0 : i32
    %c0_i32_1 = arith.constant 0 : i32
    %c0_i32_2 = arith.constant 0 : i32
    return %arg0, %c0_i32_0, %2, %c0_i32_1 : i32, i32, i32, i32
  }
  func.func @transform_2(%arg0: i32, %arg1: i32, %arg2: i32) -> (i32, i32, i32, i32) {
    %c0_i32 = arith.constant 0 : i32
    %c0_i32_0 = arith.constant 0 : i32
    %c0_i32_1 = arith.constant 0 : i32
    return %arg0, %arg1, %c0_i32, %c0_i32_0 : i32, i32, i32, i32
  }
  func.func @transform_3(%arg0: i32, %arg1: i32, %arg2: i32) -> (i32, i32, i32, i32) {
    %c0_i32 = arith.constant 0 : i32
    %c0_i32_0 = arith.constant 0 : i32
    %c0_i32_1 = arith.constant 0 : i32
    return %arg0, %arg1, %c0_i32, %c0_i32_0 : i32, i32, i32, i32
  }
}

</mosaic_0001>

<bundles_post_ra>
// kernel: tpu_custom_call.1
= control target key start
LH: loop header
LB: loop body
LE: loop exit
PB: predicated region body
PF: predicated region fallthrough
CT: control target
= control target key end

     0   :  { %9 = vsyncpa [#allocation3], 0  ;;  %s979_s0 = inlined_call_operand.hbm [shape: f32[2,4,2,128], index: 0, kind: input, shape index: {}]   ;;  %s980_s1 = inlined_call_operand.hbm [shape: f32[2,1,2,128], index: 1, kind: input, shape index: {}]   ;;  %s981_s2 = inlined_call_operand.hbm [shape: f32[2,1,8,128], index: 2, kind: output, shape index: {0}]   ;;  %s982_s3 = inlined_call_operand.hbm [shape: f32[2,1,8,128], index: 3, kind: output, shape index: {1}]  }
   0x1   :  { %11 = vsyncpa [#allocation3 + $0x1], 0 }
   0x2   :  { %12 = vsyncpa [#allocation6], 0 }
   0x3   :  { %14 = vsyncpa [#allocation6 + $0x1], 0 }
   0x4   :  { %15 = vsyncpa [#allocation4], 0 }
   0x5   :  { %17 = vsyncpa [#allocation4 + $0x1], 0 }
   0x6   :  { %18 = vsyncpa [#allocation9], 0 }
   0x7   :  { %20 = vsyncpa [#allocation9 + $0x1], 0  ;;  %s797_s12 = smov 0   ;;  %s799_s13 = smov 0  }
   0x8   :  { %s801_s14 = smov 0   ;;  %s803_s15 = smov 0  }
   0x9   :  { %s805_s16 = smov 0   ;;  %s807_s17 = smov 0  }
   0xa LB: > { %s519_s18 = sadd.s32 4294967295, %s766_s17   ;;  %s520_s19 = sadd.s32 4294967294, %s766_s17   ;;  %s766_s17 = sphi %s807_s17, %s26_s17   ;;  %s762_s16 = sphi %s805_s16, %s995_s16   ;;  %s758_s15 = sphi %s803_s15, %s994_s15   ;;  %s754_s14 = sphi %s801_s14, %s993_s14   ;;  %s750_s13 = sphi %s799_s13, %s992_s13   ;;  %s746_s12 = sphi %s797_s12, %s991_s12  }
   0xb   : > { %s45_s20 = sadd.s32 1, %s762_s16  ;;  %s60_s21 = sadd.s32 1, %s754_s14 }
   0xc   : > { %p47_p0 = scmp.ge.s32.totalorder %s45_s20, 2  ;;  %p67_p1 = scmp.ne.s32.totalorder %s754_s14, %s750_s13 }
   0xd   : > { %p68_p2 = scmp.eq.s32.totalorder %s766_s17, 0  ;;  %p73_p3 = scmp.ne.s32.totalorder %s750_s13, %s746_s12 }
   0xe   : > { %s997_s20 = smov (%p47_p0, %s45_s20), 0  ;;  %p74_p5 = scmp.eq.s32.totalorder %s519_s18, 0 }
   0xf   : > { %p838_p4 = por %p68_p2, %p67_p1  ;;  %s55_s23 = ssub.s32 %s762_s16, %s997_s20 }
  0x10   : > { %p133_p6 = scmp.eq.s32.totalorder %s519_s18, 1  ;;  %p58_p7 = scmp.eq.s32.totalorder %s55_s23, 0 }
  0x11   : > { %p844_p8 = por %p74_p5, %p73_p3  ;;  %p139_p10 = scmp.eq.s32.totalorder %s520_s19, 1 }
  0x12   : > { %p848_p9 = por %p133_p6, %p67_p1  ;;  %p983_p12 = scmp.ge.s32.totalorder %s766_s17, 2 }
  0x13   : > { %s853_s26 = scalar_select %p58_p7, %s754_s14, %s60_s21  }
  0x14   : > { %p855_p11 = por %p139_p10, %p73_p3  ;;  %183 = sbr.rel (%p983_p12) target bundleno = 63 (0x3f), region = 16 }
  0x19   : > { %186 = sbr.rel (!%p838_p4) target bundleno = 44 (0x2c), region = 20  ;;  %s187_s28 = sand.u32 (%p838_p4), 1, %s754_s14  }
  0x1a   : > { %s523_s29 = sshll.u32 (%p838_p4), %s187_s28, 3  ;;  %s188_s30 = scalar_lea.sflag (%p838_p4), [#allocation3], %s187_s28 }
  0x1b   : > { %s191_s4 = scalar_lea.vmem (%p838_p4), [#allocation2], %s523_s29 }
  0x1e   : > { %200 = vsyncadd %s188_s30, 96  ;;  %s540_s5 = sshll.u32 %s762_s16, 7  ;;  %s207_s6 = sshll.u32 %s191_s4, 4  ;;  %s208_s6 = int_to_ptr.vmem [resolvable:$true] %s207_s6 }
  0x1f   : > { %s205_s9 = scalar_lea.hbm %s979_s0, %s540_s5  ;;  %s618_s10 = scalar_lea.vmem %s208_s6, 32 }
  0x20   : > { %p619_p13 = scmp.ne.s32.totalorder %s208_s6, %s618_s10  ;;  %s768_s11 = smov [#allocation2]  }
  0x21   : > { %s620_s18 = sshll.u32 %s768_s11, 4  ;;  %s621_s18 = int_to_ptr.vmem [resolvable:$false] %s620_s18 }
  0x22   : > { %s622_s19 = scalar_lea.vmem %s621_s18, 256  ;;  %p623_p0 = scmp.lt.s32.totalorder %s208_s6, %s621_s18 }
  0x23   : > { %p624_p1 = scmp.lt.s32.totalorder %s622_s19, %s618_s10 }
  0x25   : > { %p625_p2 = por %p624_p1, %p623_p0 }
  0x27   : > { %p626_p3 = pnand %p625_p2, %p619_p13 }
  0x29   : > { %629 = shalt.err (!%p626_p3)
}
  0x2a   : > { %s769_s21 = smov 32   ;;  %s770_s23 = smov 2  }
  0x2b   : > { %213 = dma.hbm_to_vmem [thread:$0]  %s205_s9, 32, %s208_s6, %s188_s30, %s769_s21, %s769_s21, %s770_s23  }
  0x2c PF: > { %216 = sbr.rel (!%p838_p4) target bundleno = 63 (0x3f), region = 24  ;;  %s217_s28 = sand.u32 (%p838_p4), 1, %s754_s14  }
  0x2d   : > { %s526_s29 = sshll.u32 (%p838_p4), %s217_s28, 3  ;;  %s218_s4 = scalar_lea.sflag (%p838_p4), [#allocation6], %s217_s28 }
  0x2e   : > { %s221_s5 = scalar_lea.vmem (%p838_p4), [#allocation5], %s526_s29 }
  0x31   : > { %230 = vsyncadd %s218_s4, 96  ;;  %s527_s7 = sshll.u32 %s762_s16, 5  ;;  %s236_s8 = sshll.u32 %s221_s5, 4  ;;  %s237_s8 = int_to_ptr.vmem [resolvable:$true] %s236_s8 }
  0x32   : > { %s234_s18 = scalar_lea.hbm %s980_s1, %s527_s7  ;;  %s640_s19 = scalar_lea.vmem %s237_s8, 32 }
  0x33   : > { %p641_p5 = scmp.ne.s32.totalorder %s237_s8, %s640_s19  ;;  %s771_s30 = smov [#allocation5]  }
  0x34   : > { %s642_s6 = sshll.u32 %s771_s30, 4  ;;  %s643_s6 = int_to_ptr.vmem [resolvable:$false] %s642_s6 }
  0x35   : > { %s644_s22 = scalar_lea.vmem %s643_s6, 256  ;;  %p645_p4 = scmp.lt.s32.totalorder %s237_s8, %s643_s6 }
  0x36   : > { %p646_p6 = scmp.lt.s32.totalorder %s644_s22, %s640_s19 }
  0x38   : > { %p647_p7 = por %p646_p6, %p645_p4 }
  0x3a   : > { %p648_p10 = pnand %p647_p7, %p641_p5 }
  0x3c   : > { %651 = shalt.err (!%p648_p10)
}
  0x3d   : > { %s772_s9 = smov 32   ;;  %s773_s21 = smov 2  }
  0x3e   : > { %242 = dma.hbm_to_vmem [thread:$0]  %s234_s18, 32, %s237_s8, %s218_s4, %s772_s9, %s772_s9, %s773_s21  }
  0x3f PF: > { %p528_p13 = scmp.ge.s32.totalorder %s766_s17, 1  ;;  %p244_p0 = scmp.lt.s32.totalorder %s766_s17, 3 }
  0x41   : > { %p245_p1 = pnand %p528_p13, %p244_p0 }
  0x42   : > { %s879_s23 = sand.u32 (!%p245_p1), 1, %s750_s13  }
  0x43   : > { %248 = sbr.rel (%p245_p1) target bundleno = 122 (0x7a), region = 28  ;;  %s882_s28 = sshll.u32 (!%p245_p1), %s879_s23, 3 }
  0x44   : > { %s251_s29 = scalar_lea.sflag (!%p245_p1), [#allocation3], %s879_s23  ;;  %s254_s5 = scalar_lea.vmem (!%p245_p1), [#allocation2], %s882_s28 }
  0x48   : > { %729 = dma.done.wait (%p844_p8), %s251_s29, 128  }
  0x49   : > { %731 = vsyncadd (%p844_p8), %s251_s29, 4294967168  ;;  %s260_s4 = scalar_lea.sflag [#allocation6], %s879_s23  ;;  %s263_s7 = scalar_lea.vmem [#allocation5], %s882_s28 }
  0x4a   : > { %733 = dma.done.wait (%p844_p8), %s260_s4, 128  }
  0x4b   : > { %735 = vsyncadd (%p844_p8), %s260_s4, 4294967168  ;;  %v318_v0 = vlaneseq  ;;  %v314_v2 = vld [vmem:[%s254_s5] sm:$0xff]  ;;  %v315_v3 = vld [vmem:[%s263_s7] sm:$0xff]  ;;  %s536_s8 = sshll.u32 %s758_s15, 7  ;;  %s295_s10 = scalar_lea.vmem [#allocation8], %s882_s28  ;;  %v774_v7 = vmov 0.0  }
  0x4c   : > { %vm316_vm1 = vcmp.gt.f32.partialorder %v315_v3, 0.0  ;;  %v325_v4 = vsub.f32 %v314_v2, %v315_v3  ;;  %s376_s11 = sshll.u32 %s295_s10, 4  ;;  %s909_s19 = scalar_lea.hbm %s982_s3, %s536_s8  ;;  %s911_s11 = int_to_ptr.vmem [resolvable:$true] %s376_s11 }
  0x4d   : > { %v319_v1 = vshrl.u32 %v318_v0, 7  ;;  %s348_s30 = scalar_lea.sflag [#allocation9], %s879_s23  ;;  %s652_s6 = scalar_lea.vmem %s911_s11, 128 }
  0x4e   : > { %v326_v6 = vand.u32 2147483647, %v325_v4  ;;  %p653_p8 = scmp.ne.s32.totalorder %s911_s11, %s652_s6  ;;  %s775_s22 = smov [#allocation8]  }
  0x4f   : > { %vm323_vm0 = vcmp.lt.s32.totalorder %v319_v1, 2  ;;  %s656_s9 = sshll.u32 %s775_s22, 4  ;;  %s657_s9 = int_to_ptr.vmem [resolvable:$false] %s656_s9 }
  0x50   : > { %vm898_vm2 = vmand %vm316_vm1, %vm323_vm0  ;;  %v327_v9 = vmul.f32 0.5, %v326_v6  ;;  %v533_v10 = vadd.f32 -5.0, %v326_v6  ;;  %vm330_vm3 = vcmp.lt.f32.partialorder %v326_v6, 10.0  ;;  %p654_p2 = pnand %p653_p8, %p848_p9  ;;  %s658_s21 = scalar_lea.vmem %s657_s9, 256 }
  0x51   : > { %v333_v8 = vsel %vm898_vm2, 1.0, %v774_v7  ;;  %p659_p5 = scmp.lt.s32.totalorder %s911_s11, %s657_s9  ;;  %p660_p4 = scmp.lt.s32.totalorder %s658_s21, %s652_s6 }
  0x52   : > { %341 = vst [vmem:[%s295_s10] sm:$0xff] %v333_v8  ;;  %v328_v11 = vmul.f32 %v327_v9, %v326_v6  ;;  %p655_p3 = pneg %p654_p2 }
  0x53   : > { %p661_p6 = por %p660_p4, %p659_p5 }
  0x55   : > { %p662_p7 = pnand %p661_p6, %p655_p3 }
  0x57   : > { %665 = shalt.err (!%p662_p7)
}
  0x58   : > { %s666_s29 = scalar_lea.hbm %s909_s19, 128  ;;  %s670_s7 = scalar_lea.hbm %s982_s3, 256 }
  0x59   : > { %p667_p10 = scmp.ne.s32.totalorder %s909_s19, %s666_s29  ;;  %p671_p1 = scmp.lt.s32.totalorder %s909_s19, %s982_s3 }
  0x5a   : > { %p672_p8 = scmp.lt.s32.totalorder %s670_s7, %s666_s29 }
  0x5b   : > { %p668_p13 = pnand %p667_p10, %p848_p9 }
  0x5c   : > { %p673_p2 = por %p672_p8, %p671_p1 }
  0x5d   : > { %p669_p0 = pneg %p668_p13 }
  0x5f   : > { %p674_p3 = pnand %p673_p2, %p669_p0 }
  0x61   : > { %677 = shalt.err (!%p674_p3)
}
  0x62   : > { %544 = dma.vmem_to_hbm [thread:$0]  (%p848_p9), %s911_s11, 128, %s909_s19, %s348_s30   ;;  %v331_v12 = vsel %vm330_vm3, %v328_v11, %v533_v10 }
  0x63   : > { %s288_s18 = scalar_lea.vmem [#allocation7], %s882_s28  ;;  %v332_v13 = vsel %vm898_vm2, %v331_v12, 0.0  ;;  %s360_s21 = scalar_lea.hbm %s981_s2, %s536_s8 }
  0x64   : > { %s362_s6 = sshll.u32 %s288_s18, 4  ;;  %337 = vst [vmem:[%s288_s18] sm:$0xff] %v332_v13  ;;  %s343_s29 = scalar_lea.sflag [#allocation4], %s879_s23  ;;  %s363_s6 = int_to_ptr.vmem [resolvable:$true] %s362_s6 }
  0x65   : > { %s678_s5 = scalar_lea.vmem %s363_s6, 128  ;;  %s776_s28 = smov [#allocation7]  }
  0x66   : > { %p679_p5 = scmp.ne.s32.totalorder %s363_s6, %s678_s5  ;;  %s682_s11 = sshll.u32 %s776_s28, 4  ;;  %s683_s11 = int_to_ptr.vmem [resolvable:$false] %s682_s11 }
  0x67   : > { %s684_s19 = scalar_lea.vmem %s683_s11, 256  ;;  %p685_p7 = scmp.lt.s32.totalorder %s363_s6, %s683_s11 }
  0x68   : > { %p680_p4 = pnand %p679_p5, %p848_p9  ;;  %p686_p10 = scmp.lt.s32.totalorder %s684_s19, %s678_s5 }
  0x6a   : > { %p681_p6 = pneg %p680_p4  ;;  %p687_p13 = por %p686_p10, %p685_p7 }
  0x6c   : > { %p688_p0 = pnand %p687_p13, %p681_p6 }
  0x6e   : > { %691 = shalt.err (!%p688_p0)
}
  0x6f   : > { %s692_s15 = scalar_lea.hbm %s360_s21, 128  ;;  %s696_s30 = scalar_lea.hbm %s981_s2, 256 }
  0x70   : > { %p693_p1 = scmp.ne.s32.totalorder %s360_s21, %s692_s15  ;;  %p697_p3 = scmp.lt.s32.totalorder %s360_s21, %s981_s2 }
  0x71   : > { %p698_p5 = scmp.lt.s32.totalorder %s696_s30, %s692_s15 }
  0x72   : > { %p694_p8 = pnand %p693_p1, %p848_p9 }
  0x73   : > { %p699_p4 = por %p698_p5, %p697_p3 }
  0x74   : > { %p695_p2 = pneg %p694_p8 }
  0x76   : > { %p700_p12 = pnand %p699_p4, %p695_p2 }
  0x78   : > { %703 = shalt.err (!%p700_p12)
}
  0x79   : > { %543 = dma.vmem_to_hbm [thread:$0]  (%p848_p9), %s363_s6, 128, %s360_s21, %s343_s29  }
  0x7a PF: > { %s388_s10 = sand.u32 1, %s746_s12   ;;  %p990_p6 = scmp.ge.s32.totalorder %s766_s17, 2 }
  0x7b   : > { %s389_s24 = scalar_lea.sflag [#allocation4], %s388_s10 }
  0x7c   : > { %p548_p7 = pnand %p990_p6, %p855_p11 }
  0x7e   : > { %p549_p10 = pneg %p548_p7 }
  0x80   : > { %737 = dma.done.wait (%p549_p10), %s389_s24, 128  }
  0x81   : > { %739 = vsyncadd (%p549_p10), %s389_s24, 4294967168  ;;  %s398_s18 = scalar_lea.sflag [#allocation9], %s388_s10 }
  0x82   : > { %741 = dma.done.wait (%p549_p10), %s398_s18, 128  }
  0x83   : > { %743 = vsyncadd (%p549_p10), %s398_s18, 4294967168  ;;  %s26_s17 = sadd.s32 1, %s766_s17   ;;  %s991_s12 = smov %s750_s13 }
  0x84   : > { %p23_p12 = scmp.ge.s32.totalorder %s26_s17, 4   ;;  %s992_s13 = smov %s754_s14 }
  0x85   : > { %s993_s14 = smov %s853_s26  ;;  %s994_s15 = smov %s762_s16 }
  0x86   : > { %s995_s16 = smov %s997_s20  ;;  %25 = sbr.rel (!%p23_p12) target bundleno = 10 (0xa), region = 107 }
  0x8b   :  { %403 = vsyncpa [#allocation3], 1 }
  0x8c   :  { %405 = vsyncpa [#allocation3 + $0x1], 1 }
  0x8d   :  { %406 = vsyncpa [#allocation6], 1 }
  0x8e   :  { %408 = vsyncpa [#allocation6 + $0x1], 1 }
  0x8f   :  { %409 = vsyncpa [#allocation4], 1 }
  0x90   :  { %411 = vsyncpa [#allocation4 + $0x1], 1 }
  0x91   :  { %412 = vsyncpa [#allocation9], 1 }
  0x92   :  { %414 = vsyncpa [#allocation9 + $0x1], 1 }

</bundles_post_ra>
